<compile_context>
chip_gen: v7x
topology: tpu7x:2x2x1
jax: 0.10.0
libtpu: 0.0.40
codegen_flags: <defaults>
</compile_context>

<pallas_src>
import jax
import jax.numpy as jnp
import numpy as np
from jax.experimental import pallas as pl
from jax.experimental.pallas import tpu as pltpu

EMB = 18                    # embedding_size -> 18 + 2*18 + 2*18 = 90 = fcn in-dim
STATIC = 3 * EMB            # uid + mid + cat = 54
HIS = 2 * EMB               # mid_his + cat_his per step = 36
H1, H2, H3 = 200, 80, 1


# --------------------------------------------------------------------------- #
# Kernel
# --------------------------------------------------------------------------- #
def dnn_kernel(x_ref, w1_ref, b1_ref, w2_ref, b2_ref, w3_ref, b3_ref, out_ref):
    # Layer 1: merged bf16 slab [tb, 54+T*36] @ combined bf16 weight [54+T*36, 200].
    # The history sum over T is folded into this dot (w1_hist tiled T times),
    # so the seq reduction rides the MXU with f32 accumulation.
    h1 = jnp.dot(x_ref[...], w1_ref[...], preferred_element_type=jnp.float32)
    h1 = jnp.maximum(h1 + b1_ref[...], 0.0)

    # Layer 2: bf16 operands on the MXU, f32 accumulation.
    h2 = jnp.dot(h1.astype(jnp.bfloat16), w2_ref[...],
                 preferred_element_type=jnp.float32) + b2_ref[...]
    h2 = jnp.maximum(h2, 0.0)

    # Layer 3: tiny [tb,80] @ [80,1] — keep f32.
    out = jnp.dot(h2, w3_ref[...], preferred_element_type=jnp.float32) + b3_ref[...]
    out_ref[...] = out.astype(out_ref.dtype)


# --------------------------------------------------------------------------- #
# pallas_call wrapper
# --------------------------------------------------------------------------- #
def dnn_forward_pallas(x_slab, kernel_params, tb):
    """x_slab: [b_pad, 54 + T*36] bf16, b_pad % tb == 0."""
    b_pad, K = x_slab.shape
    w1c, b1, w2, b2, w3, b3 = kernel_params
    n_blocks = b_pad // tb

    row_spec = pl.BlockSpec((tb, K), lambda i: (i, 0))          # streamed slab tile
    res_spec = lambda a: pl.BlockSpec(a.shape, lambda i: (0, 0))  # VMEM-resident

    return pl.pallas_call(
        dnn_kernel,
        out_shape=jax.ShapeDtypeStruct((b_pad, H3), jnp.float32),
        grid=(n_blocks,),
        in_specs=[
            row_spec,            # merged feature slab (dominant DMA stream)
            res_spec(w1c),       # [54+T*36, 200] bf16
            res_spec(b1),        # [1, 200]
            res_spec(w2),        # [200, 80] bf16
            res_spec(b2),        # [1, 80]
            res_spec(w3),        # [80, 1]
            res_spec(b3),        # [1, 1]
        ],
        out_specs=pl.BlockSpec((tb, H3), lambda i: (i, 0)),
        compiler_params=pltpu.CompilerParams(
            dimension_semantics=("parallel",),     # shard batch across v7x TCs
            vmem_limit_bytes=32 * 1024 * 1024,     # lift v5e's 16 MiB default
        ),
    )(x_slab, w1c, b1, w2, b2, w3, b3)


# --------------------------------------------------------------------------- #
# Feature assembly glue + tiling choices
# --------------------------------------------------------------------------- #
def _round_up(x, m):
    return ((x + m - 1) // m) * m


def _choose_batch_tile(B, block_b):
    """Large tiles, but >=2 grid blocks when possible (v7x megacore)."""
    if B <= 16:
        return B                      # single block == full array dims (rule-exempt)
    half = _round_up(-(-B // 2), 16)  # ceil(B/2), 16-sublane aligned for bf16
    return max(16, min(block_b, half))


def prepare_kernel_params(params, T):
    """One-time prep (hoisted out of the per-call path): combined layer-1
    weight [54 + T*36, 200] (static | T-tiled history) and bf16 casts."""
    w1s, w1h, b1, w2, b2, w3, b3 = params
    w1c = jnp.concatenate([w1s, jnp.tile(w1h, (T, 1))], axis=0).astype(jnp.bfloat16)
    return (w1c, b1, w2.astype(jnp.bfloat16), b2, w3, b3)


def model_dnn_forward(inputs, tables, kernel_params, *, block_b=2048):
    """Embedding lookups + feature assembly, then the Pallas MLP kernel."""
    (uid_ph, mid_ph, mid_his_ph, cat_ph, cat_his_ph,
     mask, seq_len_ph, target_ph, lr) = inputs      # mask/seq_len/target/lr unused
    uid_tbl, mid_tbl, cat_tbl = tables

    B, T = mid_his_ph.shape
    tb = _choose_batch_tile(B, block_b)
    b_pad = _round_up(B, tb)

    if b_pad != B:
        # Pad the tiny int32 index vectors (index 0 is a valid row) instead of
        # the big gathered slab; pad rows produce garbage sliced off below.
        p = b_pad - B
        uid_ph = jnp.pad(uid_ph, (0, p))
        mid_ph = jnp.pad(mid_ph, (0, p))
        cat_ph = jnp.pad(cat_ph, (0, p))
        mid_his_ph = jnp.pad(mid_his_ph, ((0, p), (0, 0)))
        cat_his_ph = jnp.pad(cat_his_ph, ((0, p), (0, 0)))

    uid_emb = jnp.take(uid_tbl, uid_ph, axis=0)               # [b_pad, E]
    mid_emb = jnp.take(mid_tbl, mid_ph, axis=0)                # [b_pad, E]
    cat_emb = jnp.take(cat_tbl, cat_ph, axis=0)                # [b_pad, E]
    mid_his = jnp.take(mid_tbl, mid_his_ph, axis=0)             # [b_pad, T, E]
    cat_his = jnp.take(cat_tbl, cat_his_ph, axis=0)             # [b_pad, T, E]

    # Lane-dense merged slab: (uid | mid | cat | flattened history) -> [b_pad, 54+T*36].
    his_slab = jnp.concatenate([mid_his, cat_his], axis=2).reshape(b_pad, T * HIS)
    x_slab = jnp.concatenate([uid_emb, mid_emb, cat_emb, his_slab], axis=1)
    x_slab = x_slab.astype(jnp.bfloat16)      # halve the dominant HBM read

    out = dnn_forward_pallas(x_slab, kernel_params, tb)
    return out[:B]


# --------------------------------------------------------------------------- #
# Pure-JAX reference (matches the PyTorch forward, full f32)
# --------------------------------------------------------------------------- #
def reference_forward(inputs, tables, params):
    (uid_ph, mid_ph, mid_his_ph, cat_ph, cat_his_ph, *_rest) = inputs
    uid_tbl, mid_tbl, cat_tbl = tables
    w1s, w1h, b1, w2, b2, w3, b3 = params

    uid_emb = uid_tbl[uid_ph]
    mid_emb = mid_tbl[mid_ph]
    cat_emb = cat_tbl[cat_ph]
    item_eb = jnp.concatenate([mid_emb, cat_emb], axis=1)
    item_his_eb = jnp.concatenate([mid_tbl[mid_his_ph], cat_tbl[cat_his_ph]], axis=2)
    item_his_eb_sum = jnp.sum(item_his_eb, axis=1)
    inp = jnp.concatenate([uid_emb, item_eb, item_his_eb_sum], axis=1)   # [B, 90]
    w1 = jnp.concatenate([w1s, w1h], axis=0)                             # [90, 200]
    h1 = jnp.maximum(inp @ w1 + b1, 0.0)
    h2 = jnp.maximum(h1 @ w2 + b2, 0.0)
    return h2 @ w3 + b3


# --------------------------------------------------------------------------- #
if __name__ == "__main__":
    key = jax.random.PRNGKey(0)
    B, T = 32, 8                      # small, but exercises a 2-block grid (tb=16)
    n_uid, n_mid, n_cat = 100, 200, 50

    ks = jax.random.split(key, 12)

    # Embedding tables (PyTorch nn.Embedding ~ N(0,1)).
    uid_tbl = jax.random.normal(ks[0], (n_uid, EMB), jnp.float32)
    mid_tbl = jax.random.normal(ks[1], (n_mid, EMB), jnp.float32)
    cat_tbl = jax.random.normal(ks[2], (n_cat, EMB), jnp.float32)
    tables = (uid_tbl, mid_tbl, cat_tbl)

    # MLP params stored as [in, out]; layer 1 split row-wise: 54 static / 36 hist.
    def lin_init(k, fan_in, fan_out):
        bound = 1.0 / np.sqrt(fan_in)
        return jax.random.uniform(k, (fan_in, fan_out), jnp.float32, -bound, bound)

    w1 = lin_init(ks[3], 5 * EMB, H1)                 # [90, 200]
    b1 = lin_init(ks[4], 5 * EMB, H1)[0:1, :]         # [1, 200]
    w2 = lin_init(ks[5], H1, H2)                      # [200, 80]
    b2 = lin_init(ks[6], H1, H2)[0:1, :]              # [1, 80]
    w3 = lin_init(ks[7], H2, H3)                      # [80, 1]
    b3 = lin_init(ks[8], H2, H3)[0:1, :]              # [1, 1]
    w1s, w1h = w1[:STATIC], w1[STATIC:]               # [54, 200], [36, 200]
    params = (w1s, w1h, b1, w2, b2, w3, b3)

    # One-time kernel-param prep (combined / tiled / bf16 layer-1+2 weights).
    kernel_params = prepare_kernel_params(params, T)

    # Forward inputs (mask / seq_len / target / lr are unused by Model_DNN).
    uid_ph = jax.random.randint(ks[9], (B,), 0, n_uid, jnp.int32)
    mid_ph = jax.random.randint(ks[10], (B,), 0, n_mid, jnp.int32)
    cat_ph = jax.random.randint(ks[11], (B,), 0, n_cat, jnp.int32)
    mid_his_ph = jax.random.randint(jax.random.fold_in(key, 100), (B, T), 0, n_mid, jnp.int32)
    cat_his_ph = jax.random.randint(jax.random.fold_in(key, 101), (B, T), 0, n_cat, jnp.int32)
    mask = jnp.ones((B, T), jnp.float32)
    seq_len_ph = jnp.full((B,), T, jnp.int32)
    target_ph = jnp.zeros((B, 2), jnp.float32)
    lr = jnp.float32(0.001)

    inputs = (uid_ph, mid_ph, mid_his_ph, cat_ph, cat_his_ph,
              mask, seq_len_ph, target_ph, lr)

    out = model_dnn_forward(inputs, tables, kernel_params)
    out = jax.block_until_ready(out)

    ref = reference_forward(inputs, tables, params)
    # bf16 activations/weights on layers 1-2 (f32 accumulation) -> looser tolerance.
    np.testing.assert_allclose(np.asarray(out), np.asarray(ref), rtol=3e-2, atol=3e-2)
    assert out.shape == (B, 1)
    print("KERNEL_OK")
</pallas_src>

<mosaic_0001>
module attributes {stable_mosaic.version = 11 : i64} {
  func.func @dnn_kernel(%arg0: i32, %arg1: memref<16x342xbf16, #tpu.memory_space<vmem>>, %arg2: memref<342x200xbf16, #tpu.memory_space<vmem>>, %arg3: memref<1x200xf32, #tpu.memory_space<vmem>>, %arg4: memref<200x80xbf16, #tpu.memory_space<vmem>>, %arg5: memref<1x80xf32, #tpu.memory_space<vmem>>, %arg6: memref<80x1xf32, #tpu.memory_space<vmem>>, %arg7: memref<1x1xf32, #tpu.memory_space<vmem>>, %arg8: memref<16x1xf32, #tpu.memory_space<vmem>>) attributes {dimension_semantics = [#tpu.dimension_semantics<parallel>], iteration_bounds = array<i64: 2>, scalar_prefetch = 0 : i64, scratch_operands = 0 : i64, tpu.core_type = #tpu.core_type<tc>, window_params = [{transform_indices = @transform_0, window_bounds = array<i64: 16, 342>}, {pipeline_mode = #tpu.pipeline_mode<synchronous>, transform_indices = @transform_1, window_bounds = array<i64: 342, 200>}, {pipeline_mode = #tpu.pipeline_mode<synchronous>, transform_indices = @transform_2, window_bounds = array<i64: 1, 200>}, {pipeline_mode = #tpu.pipeline_mode<synchronous>, transform_indices = @transform_3, window_bounds = array<i64: 200, 80>}, {pipeline_mode = #tpu.pipeline_mode<synchronous>, transform_indices = @transform_4, window_bounds = array<i64: 1, 80>}, {pipeline_mode = #tpu.pipeline_mode<synchronous>, transform_indices = @transform_5, window_bounds = array<i64: 80, 1>}, {pipeline_mode = #tpu.pipeline_mode<synchronous>, transform_indices = @transform_6, window_bounds = array<i64: 1, 1>}, {transform_indices = @transform_7, window_bounds = array<i64: 16, 1>}]} {
    %c0 = arith.constant 0 : index
    %c0_0 = arith.constant 0 : index
    %0 = vector.load %arg1[%c0, %c0_0] : memref<16x342xbf16, #tpu.memory_space<vmem>>, vector<16x342xbf16>
    %c0_1 = arith.constant 0 : index
    %c0_2 = arith.constant 0 : index
    %1 = vector.load %arg2[%c0_1, %c0_2] : memref<342x200xbf16, #tpu.memory_space<vmem>>, vector<342x200xbf16>
    %cst = arith.constant dense<0.000000e+00> : vector<16x200xf32>
    %2 = tpu.matmul %0, %1, %cst {dimension_numbers = #tpu.dot_dimension_numbers<[1], [0], [0], [1], [0, 0, 1, 1], [], []>} : vector<16x342xbf16>, vector<342x200xbf16>, vector<16x200xf32> -> vector<16x200xf32>
    %c0_3 = arith.constant 0 : index
    %c0_4 = arith.constant 0 : index
    %3 = vector.load %arg3[%c0_3, %c0_4] : memref<1x200xf32, #tpu.memory_space<vmem>>, vector<1x200xf32>
    %4 = vector.broadcast %3 : vector<1x200xf32> to vector<16x200xf32>
    %5 = arith.addf %2, %4 : vector<16x200xf32>
    %cst_5 = arith.constant 0.000000e+00 : f32
    %6 = vector.broadcast %cst_5 : f32 to vector<16x200xf32>
    %7 = arith.maximumf %5, %6 : vector<16x200xf32>
    %8 = arith.truncf %7 : vector<16x200xf32> to vector<16x200xbf16>
    %c0_6 = arith.constant 0 : index
    %c0_7 = arith.constant 0 : index
    %9 = vector.load %arg4[%c0_6, %c0_7] : memref<200x80xbf16, #tpu.memory_space<vmem>>, vector<200x80xbf16>
    %cst_8 = arith.constant dense<0.000000e+00> : vector<16x80xf32>
    %10 = tpu.matmul %8, %9, %cst_8 {dimension_numbers = #tpu.dot_dimension_numbers<[1], [0], [0], [1], [0, 0, 1, 1], [], []>} : vector<16x200xbf16>, vector<200x80xbf16>, vector<16x80xf32> -> vector<16x80xf32>
    %c0_9 = arith.constant 0 : index
    %c0_10 = arith.constant 0 : index
    %11 = vector.load %arg5[%c0_9, %c0_10] : memref<1x80xf32, #tpu.memory_space<vmem>>, vector<1x80xf32>
    %12 = vector.broadcast %11 : vector<1x80xf32> to vector<16x80xf32>
    %13 = arith.addf %10, %12 : vector<16x80xf32>
    %cst_11 = arith.constant 0.000000e+00 : f32
    %14 = vector.broadcast %cst_11 : f32 to vector<16x80xf32>
    %15 = arith.maximumf %13, %14 : vector<16x80xf32>
    %c0_12 = arith.constant 0 : index
    %c0_13 = arith.constant 0 : index
    %16 = vector.load %arg6[%c0_12, %c0_13] : memref<80x1xf32, #tpu.memory_space<vmem>>, vector<80x1xf32>
    %cst_14 = arith.constant dense<0.000000e+00> : vector<16x1xf32>
    %17 = tpu.matmul %15, %16, %cst_14 {dimension_numbers = #tpu.dot_dimension_numbers<[1], [0], [0], [1], [0, 0, 1, 1], [], []>} : vector<16x80xf32>, vector<80x1xf32>, vector<16x1xf32> -> vector<16x1xf32>
    %c0_15 = arith.constant 0 : index
    %c0_16 = arith.constant 0 : index
    %18 = vector.load %arg7[%c0_15, %c0_16] : memref<1x1xf32, #tpu.memory_space<vmem>>, vector<1x1xf32>
    %19 = vector.broadcast %18 : vector<1x1xf32> to vector<16x1xf32>
    %20 = arith.addf %17, %19 : vector<16x1xf32>
    %c0_17 = arith.constant 0 : index
    %c0_18 = arith.constant 0 : index
    %21 = vector.load %arg8[%c0_17, %c0_18] : memref<16x1xf32, #tpu.memory_space<vmem>>, vector<16x1xf32>
    tpu.vector_store %arg8[%c0_17, %c0_18], %20 {strides = array<i32>} : memref<16x1xf32, #tpu.memory_space<vmem>>, vector<16x1xf32>,
    return
  }
  func.func @transform_0(%arg0: i32) -> (i32, i32) {
    %c0_i32 = arith.constant 0 : i32
    %c0_i32_0 = arith.constant 0 : i32
    return %arg0, %c0_i32 : i32, i32
  }
  func.func @transform_1(%arg0: i32) -> (i32, i32) {
    %c0_i32 = arith.constant 0 : i32
    %c0_i32_0 = arith.constant 0 : i32
    %c0_i32_1 = arith.constant 0 : i32
    return %c0_i32, %c0_i32_0 : i32, i32
  }
  func.func @transform_2(%arg0: i32) -> (i32, i32) {
    %c0_i32 = arith.constant 0 : i32
    %c0_i32_0 = arith.constant 0 : i32
    %c0_i32_1 = arith.constant 0 : i32
    return %c0_i32, %c0_i32_0 : i32, i32
  }
  func.func @transform_3(%arg0: i32) -> (i32, i32) {
    %c0_i32 = arith.constant 0 : i32
    %c0_i32_0 = arith.constant 0 : i32
    %c0_i32_1 = arith.constant 0 : i32
    return %c0_i32, %c0_i32_0 : i32, i32
  }
  func.func @transform_4(%arg0: i32) -> (i32, i32) {
    %c0_i32 = arith.constant 0 : i32
    %c0_i32_0 = arith.constant 0 : i32
    %c0_i32_1 = arith.constant 0 : i32
    return %c0_i32, %c0_i32_0 : i32, i32
  }
  func.func @transform_5(%arg0: i32) -> (i32, i32) {
    %c0_i32 = arith.constant 0 : i32
    %c0_i32_0 = arith.constant 0 : i32
    %c0_i32_1 = arith.constant 0 : i32
    return %c0_i32, %c0_i32_0 : i32, i32
  }
  func.func @transform_6(%arg0: i32) -> (i32, i32) {
    %c0_i32 = arith.constant 0 : i32
    %c0_i32_0 = arith.constant 0 : i32
    %c0_i32_1 = arith.constant 0 : i32
    return %c0_i32, %c0_i32_0 : i32, i32
  }
  func.func @transform_7(%arg0: i32) -> (i32, i32) {
    %c0_i32 = arith.constant 0 : i32
    %c0_i32_0 = arith.constant 0 : i32
    return %arg0, %c0_i32 : i32, i32
  }
}

</mosaic_0001>

<bundles_post_ra>
// kernel: tpu_custom_call.1
= control target key start
LH: loop header
LB: loop body
LE: loop exit
PB: predicated region body
PF: predicated region fallthrough
CT: control target
= control target key end

     0   :  { %s1281_s26 = smov 0   ;;  %s1525_s0 = inlined_call_operand.vmem [shape: bf16[32,342], index: 0, kind: input, shape index: {}]   ;;  %s1526_s1 = inlined_call_operand.vmem [shape: bf16[342,200], index: 1, kind: input, shape index: {}]   ;;  %s1527_s2 = inlined_call_operand.vmem [shape: f32[1,200], index: 2, kind: input, shape index: {}]   ;;  %s1528_s3 = inlined_call_operand.vmem [shape: bf16[200,80], index: 3, kind: input, shape index: {}]   ;;  %s1529_s4 = inlined_call_operand.vmem [shape: f32[1,80], index: 4, kind: input, shape index: {}]   ;;  %s1530_s5 = inlined_call_operand.vmem [shape: f32[80,1], index: 5, kind: input, shape index: {}]   ;;  %s1531_s6 = inlined_call_operand.<no memory space> [shape: f32[1,1], index: 6, kind: input, shape index: {}]   ;;  %s1532_s7 = inlined_call_operand.vmem [shape: f32[32,1], index: 7, kind: output, shape index: {}]  }
   0x1   :  { %v12_v0 = vstv %s1531_s6 }
   0x2   :  { %13 = vst [vmem:[#allocation2] sm:$0x1] %v12_v0 }
   0x3 LB: > { %s996_s27 = sadd.s32 4294967295, %s1235_s26   ;;  %p1000_p0 = scmp.ge.s32.totalorder %s1235_s26, 1  ;;  %s1235_s26 = sphi %s1281_s26, %s19_s26  }
   0x4   : > { %p241_p1 = scmp.lt.s32.totalorder %s1235_s26, 3 }
   0x6   : > { %p242_p2 = pnand %p1000_p0, %p241_p1 }
   0x7   : > { %v1147_v1 = vld [vmem:[%s1526_s1 + $0x4] ss:$8 sps:$4 sm:$0xff] (!%p242_p2)   ;;  %v1149_v2 = vld [vmem:[%s1526_s1] ss:$8 sps:$4 sm:$0xff] (!%p242_p2)   ;;  %v1150_v3 = vld [vmem:[%s1526_s1 + $0x14] ss:$8 sps:$4 sm:$0xff] (!%p242_p2)  }
   0x8   : > { %245 = sbr.rel (%p242_p2) target bundleno = 752 (0x2f0), region = 48  ;;  %588 = vmatprep.subr.bf16.mxu0 (!%p242_p2), %v1147_v1  ;;  %v1237_v4 = vmov (!%p242_p2), 0   ;;  %v1152_v5 = vld [vmem:[%s1526_s1 + $0x10] ss:$8 sps:$4 sm:$0xff] (!%p242_p2)   ;;  %v1153_v6 = vld [vmem:[%s1526_s1 + $0x24] ss:$8 sps:$4 sm:$0xff] (!%p242_p2)  }
   0x9   : > { %795 = vmatprep.subr.bf16.mxu1 (!%p242_p2), %v1237_v4  ;;  %589 = vmatpush1.bf16.msra.mxu0 (!%p242_p2), %v1149_v2  ;;  %s1001_s14 = sshll.u32 (!%p242_p2), %s996_s27, 1  ;;  %v1155_v7 = vld [vmem:[%s1526_s1 + $0x20] ss:$8 sps:$4 sm:$0xff] (!%p242_p2)   ;;  %v1156_v8 = vld [vmem:[%s1526_s1 + $0x34] ss:$8 sps:$4 sm:$0xff] (!%p242_p2)   ;;  %vm581_vm0 = vcmask (!%p242_p2), 1042432  }
   0xa   : > { %590 = vmatprep.subr.bf16.mxu0 (!%p242_p2), %v1150_v3  ;;  %p275_p3 = scmp.lt.s32.totalorder (!%p242_p2), %s1001_s14, 3  ;;  %v1158_v9 = vld [vmem:[%s1526_s1 + $0x30] ss:$8 sps:$4 sm:$0xff] (!%p242_p2)   ;;  %v1159_v10 = vld [vmem:[%s1526_s1 + $0x44] ss:$8 sps:$4 sm:$0xff] (!%p242_p2)   ;;  %vm577_vm1 = vcmask (!%p242_p2), 703488  }
   0xb   : > { %v1161_v11 = vld [vmem:[%s1526_s1 + $0x40] ss:$8 sps:$4 sm:$0xff] (!%p242_p2)   ;;  %v1162_v12 = vld [vmem:[%s1526_s1 + $0x54] ss:$8 sps:$4 sm:$0xff] (!%p242_p2)   ;;  %v1164_v13 = vld [vmem:[%s1526_s1 + $0x50] ss:$8 sps:$4 sm:$0xff] (!%p242_p2)  }
   0xc   : > { %v1165_v14 = vld [vmem:[%s1526_s1 + $0x64] ss:$8 sps:$4 sm:$0xff] (!%p242_p2)   ;;  %v1167_v15 = vld [vmem:[%s1526_s1 + $0x60] ss:$8 sps:$4 sm:$0xff] (!%p242_p2)   ;;  %v1168_v17 = vld [vmem:[%s1526_s1 + $0x74] ss:$8 sps:$4 sm:$0xff] (!%p242_p2)  }
   0xd   : > { %591 = vmatpush1.bf16.msra.mxu0 (!%p242_p2), %v1152_v5  ;;  %v1170_v18 = vld [vmem:[%s1526_s1 + $0x70] ss:$8 sps:$4 sm:$0xff] (!%p242_p2)   ;;  %v1171_v19 = vld [vmem:[%s1526_s1 + $0x84] ss:$8 sps:$4 sm:$0xff] (!%p242_p2)   ;;  %v1173_v20 = vld [vmem:[%s1526_s1 + $0x80] ss:$8 sps:$4 sm:$0xff] (!%p242_p2)   ;;  %v337_v5 = vlaneseq (!%p242_p2) }
   0xe   : > { %592 = vmatprep.subr.bf16.mxu0 (!%p242_p2), %v1153_v6  ;;  %v1216_v21 = vld [vmem:[%s1528_s3] sm:$0xff] (!%p242_p2)   ;;  %v1174_v22 = vld [vmem:[%s1526_s1 + $0x94] ss:$8 sps:$4 sm:$0xff] (!%p242_p2)   ;;  %v1217_v23 = vld [vmem:[%s1528_s3 + $0x8] sm:$0xff] (!%p242_p2)   ;;  %vm791_vm2 = vcmask (!%p242_p2), 1043456   ;;  %vm787_vm3 = vcmask (!%p242_p2), 588800  }
   0xf   : > { %s1534_s14 = smov (!%p275_p3, %s1001_s14), 3  ;;  %796 = vmatpush1.bf16.msra.mxu1 %v1216_v21  ;;  %v1176_v24 = vld [vmem:[%s1526_s1 + $0x90] ss:$8 sps:$4 sm:$0xff]   ;;  %v1177_v25 = vld [vmem:[%s1526_s1 + $0xa4] ss:$8 sps:$4 sm:$0xff]   ;;  %v338_v6 = vshrl.u32 %v337_v5, 7 }
  0x10   : > { %s1137_s28 = smul.u32 12, %s1534_s14  ;;  %797 = vmatprep.subr.bf16.mxu1 %v1237_v4  ;;  %v1218_v26 = vld [vmem:[%s1528_s3 + $0x10] sm:$0xff]   ;;  %v1179_v27 = vld [vmem:[%s1526_s1 + $0xa0] ss:$8 sps:$4 sm:$0xff]   ;;  %v1219_v29 = vld [vmem:[%s1528_s3 + $0x18] sm:$0xff]   ;;  %vm855_vm4 = vcmask 654336  }
  0x11   : > { %593 = vmatpush1.bf16.msra.mxu0 %v1155_v7  ;;  %v1180_v28 = vld [vmem:[%s1526_s1 + $0xb4] ss:$8 sps:$4 sm:$0xff]   ;;  %v1182_v30 = vld [vmem:[%s1526_s1 + $0xb0] ss:$8 sps:$4 sm:$0xff]   ;;  %v1183_v31 = vld [vmem:[%s1526_s1 + $0xc4] ss:$8 sps:$4 sm:$0xff]  }
  0x12   : > { %594 = vmatprep.subr.bf16.mxu0 %v1156_v8  ;;  %s1335_s11 = scalar_lea.vmem %s1525_s0, %s1137_s28  ;;  %v1220_v32 = vld [vmem:[%s1528_s3 + $0x20] sm:$0xff]   ;;  %v1186_v34 = vld [vmem:[%s1526_s1 + $0xd4] ss:$8 sps:$4 sm:$0xff]   ;;  %v1221_v35 = vld [vmem:[%s1528_s3 + $0x28] sm:$0xff]   ;;  %v343_v8 = vsub.s32 1, %v338_v6  ;;  %s1004_s16 = sshll.u32 %s1534_s14, 3 }
  0x13   : > { %v1197_v16 = vld [vmem:[%s1335_s11 + $0x4] ss:$12 sps:$4 sm:$0xff]   ;;  %798 = vmatpush1.bf16.msra.mxu1 %v1217_v23  ;;  %v1185_v33 = vld [vmem:[%s1526_s1 + $0xc0] ss:$8 sps:$4 sm:$0xff]   ;;  %v1192_v40 = vld [vmem:[%s1526_s1 + $0xf4] ss:$8 sps:$4 sm:$0xff]   ;;  %s285_s19 = scalar_lea.vmem %s1532_s7, %s1004_s16 }
  0x14   : > { %620 = vmatprep.mubr.bf16.mxu0 %v1197_v16  ;;  %799 = vmatprep.subr.bf16.mxu1 %v1237_v4  ;;  %v1188_v36 = vld [vmem:[%s1526_s1 + $0xd0] ss:$8 sps:$4 sm:$0xff]   ;;  %v1189_v37 = vld [vmem:[%s1526_s1 + $0xe4] ss:$8 sps:$4 sm:$0xff]   ;;  %v1191_v39 = vld [vmem:[%s1526_s1 + $0xe0] ss:$8 sps:$4 sm:$0xff]  }
  0x15   : > { %595 = vmatpush1.bf16.msra.mxu0 %v1158_v9  ;;  %v1222_v38 = vld [vmem:[%s1528_s3 + $0x30] sm:$0xff]   ;;  %v1223_v41 = vld [vmem:[%s1528_s3 + $0x38] sm:$0xff]   ;;  %v1201_v43 = vld [vmem:[%s1526_s1 + $0x104] ss:$8 sps:$4 sm:$0xff]   ;;  %vm937_vm5 = vcmask 7168  }
  0x16   : > { %596 = vmatprep.subr.bf16.mxu0 %v1159_v10  ;;  %v1194_v42 = vld [vmem:[%s1526_s1 + $0xf0] ss:$8 sps:$4 sm:$0xff]   ;;  %v1224_v44 = vld [vmem:[%s1528_s3 + $0x40] sm:$0xff]   ;;  %v1204_v47 = vld [vmem:[%s1526_s1 + $0x114] ss:$8 sps:$4 sm:$0xff]  }
  0x17   : > { %800 = vmatpush1.bf16.msra.mxu1 %v1218_v26  ;;  %v1195_v45 = vld [vmem:[%s1335_s11] ss:$12 sps:$4 sm:$0xff]   ;;  %v1202_v49 = vld [vmem:[%s1526_s1 + $0x110] ss:$8 sps:$4 sm:$0xff]   ;;  %v1210_v52 = vld [vmem:[%s1526_s1 + $0x134] ss:$8 sps:$4 sm:$0xff]  }
  0x18   : > { %801 = vmatprep.subr.bf16.mxu1 %v1237_v4  ;;  %v1199_v46 = vld [vmem:[%s1526_s1 + $0x100] ss:$8 sps:$4 sm:$0xff]   ;;  %v1207_v50 = vld [vmem:[%s1526_s1 + $0x124] ss:$8 sps:$4 sm:$0xff]   ;;  %v1208_v53 = vld [vmem:[%s1526_s1 + $0x130] ss:$8 sps:$4 sm:$0xff]  }
  0x19   : > { %597 = vmatpush1.bf16.msra.mxu0 %v1161_v11  ;;  %v1225_v48 = vld [vmem:[%s1528_s3 + $0x48] sm:$0xff]   ;;  %v334_v55 = vld [vmem:[%s1526_s1 + $0x150] sm:$0x77]  ;;  %v1227_v62 = vld [vmem:[%s1528_s3 + $0x58] sm:$0xff]  }
  0x1a   : > { %598 = vmatprep.subr.bf16.mxu0 %v1162_v12  ;;  %v1205_v51 = vld [vmem:[%s1526_s1 + $0x120] ss:$8 sps:$4 sm:$0xff]   ;;  %v1213_v54 = vld [vmem:[%s1526_s1 + $0x144] ss:$8 sps:$4 sm:$0xff]   ;;  %v1051_v57 = vcombine.high %v334_v55, %v334_v55  ;;  %v1050_v58 = vcombine.low %v334_v55, %v334_v55  ;;  %v1226_v61 = vld [vmem:[%s1528_s3 + $0x50] sm:$0xff]  }
  0x1b   : > { %802 = vmatpush1.bf16.msra.mxu1 %v1219_v29  ;;  %v1211_v56 = vld [vmem:[%s1526_s1 + $0x140] ss:$8 sps:$4 sm:$0xff]   ;;  %v840_v23 = vld [vmem:[%s1530_s5 + $0x10] sm:$0xff] }
  0x1c   : > { %803 = vmatprep.subr.bf16.mxu1 %v1237_v4  ;;  %v583_v59 = vsel %vm581_vm0, %v1050_v58, 0  ;;  %v1198_v60 = vld [vmem:[%s1335_s11 + $0x8] ss:$12 sps:$4 sm:$0xff]   ;;  %v1228_v63 = vld [vmem:[%s1528_s3 + $0x60] ss:$0 sps:$4 sm:$0xff]  }
  0x1d   : > { %599 = vmatpush1.bf16.msra.mxu0 %v1164_v13  ;;  %v793_v0 = vsel %vm791_vm2, %v1228_v63, 0  ;;  %v838_v1 = vld [vmem:[%s1530_s5] sm:$0xff]  ;;  %v839_v2 = vld [vmem:[%s1530_s5 + $0x8] sm:$0xff] }
  0x1e   : > { %600 = vmatprep.subr.bf16.mxu0 %v1165_v14  ;;  %v1109_v3 = vpack.c.bf16 %v839_v2, %v838_v1  ;;  %v335_v7 = vld [vmem:[%s1527_s2] sm:$0x3]  ;;  %v843_v29 = vld [vmem:[%s1530_s5 + $0x28] sm:$0xff] }
  0x1f   : > { %804 = vmatpush1.bf16.msra.mxu1 %v1220_v32  ;;  %v344_v10 = vrot.slane %v335_v7, %v343_v8  ;;  %v845_v32 = vld [vmem:[%s1530_s5 + $0x38] sm:$0xff] }
  0x20   : > { %805 = vmatprep.subr.bf16.mxu1 %v1237_v4 }
  0x21   : > { %601 = vmatpush1.bf16.msra.mxu0 %v1167_v15 }
  0x22   : > { %602 = vmatprep.subr.bf16.mxu0 %v1168_v17 }
  0x23   : > { %806 = vmatpush1.bf16.msra.mxu1 %v1221_v35  ;;  %v847_v35 = vld [vmem:[%s1530_s5 + $0x48] sm:$0xff] }
  0x24   : > { %807 = vmatprep.subr.bf16.mxu1 %v1237_v4 }
  0x25   : > { %603 = vmatpush1.bf16.msra.mxu0 %v1170_v18 }
  0x26   : > { %604 = vmatprep.subr.bf16.mxu0 %v1171_v19 }
  0x27   : > { %808 = vmatpush1.bf16.msra.mxu1 %v1222_v38 }
  0x28   : > { %809 = vmatprep.subr.bf16.mxu1 %v1237_v4 }
  0x29   : > { %605 = vmatpush1.bf16.msra.mxu0 %v1173_v20 }
  0x2a   : > { %606 = vmatprep.subr.bf16.mxu0 %v1174_v22 }
  0x2b   : > { %810 = vmatpush1.bf16.msra.mxu1 %v1223_v41 }
  0x2c   : > { %811 = vmatprep.subr.bf16.mxu1 %v1237_v4 }
  0x2d   : > { %607 = vmatpush1.bf16.msra.mxu0 %v1176_v24  ;;  %v841_v24 = vld [vmem:[%s1530_s5 + $0x18] sm:$0xff] }
  0x2e   : > { %608 = vmatprep.subr.bf16.mxu0 %v1177_v25 }
  0x2f   : > { %812 = vmatpush1.bf16.msra.mxu1 %v1224_v44 }
  0x30   : > { %813 = vmatprep.subr.bf16.mxu1 %v1237_v4 }
  0x31   : > { %609 = vmatpush1.bf16.msra.mxu0 %v1179_v27  ;;  %v1113_v27 = vpack.c.bf16 %v841_v24, %v840_v23 }
  0x32   : > { %610 = vmatprep.subr.bf16.mxu0 %v1180_v28  ;;  %v842_v28 = vld [vmem:[%s1530_s5 + $0x20] sm:$0xff] }
  0x33   : > { %814 = vmatpush1.bf16.msra.mxu1 %v1225_v48 }
  0x34   : > { %815 = vmatprep.subr.bf16.mxu1 %v1237_v4 }
  0x35   : > { %611 = vmatpush1.bf16.msra.mxu0 %v1182_v30  ;;  %v1117_v30 = vpack.c.bf16 %v843_v29, %v842_v28 }
  0x36   : > { %612 = vmatprep.subr.bf16.mxu0 %v1183_v31  ;;  %v844_v31 = vld [vmem:[%s1530_s5 + $0x30] sm:$0xff] }
  0x37   : > { %816 = vmatpush1.bf16.msra.mxu1 %v1226_v61 }
  0x38   : > { %817 = vmatprep.subr.bf16.mxu1 %v1237_v4 }
  0x39   : > { %613 = vmatpush1.bf16.msra.mxu0 %v1185_v33  ;;  %v1121_v33 = vpack.c.bf16 %v845_v32, %v844_v31 }
  0x3a   : > { %614 = vmatprep.subr.bf16.mxu0 %v1186_v34  ;;  %v846_v34 = vld [vmem:[%s1530_s5 + $0x40] sm:$0xff] }
  0x3b   : > { %818 = vmatpush1.bf16.msra.mxu1 %v1227_v62 }
  0x3c   : > { %819 = vmatprep.subr.bf16.mxu1 %v1237_v4 }
  0x3d   : > { %615 = vmatpush1.bf16.msra.mxu0 %v1188_v36  ;;  %v1125_v36 = vpack.c.bf16 %v847_v35, %v846_v34 }
  0x3e   : > { %616 = vmatprep.subr.bf16.mxu0 %v1189_v37  ;;  %v1054_v37 = vld [vmem:[%s1529_s4] ss:$0 sm:$0xff] }
  0x3f   : > { %820 = vmatpush1.bf16.msra.mxu1 %v793_v0 }
  0x40   : > { %1110 = vmatprep.subr.bf16.mxu1 %v1109_v3 }
  0x41   : > { %617 = vmatpush1.bf16.msra.mxu0 %v1191_v39 }
  0x42   : > { %618 = vmatprep.subr.bf16.mxu0 %v1192_v40 }
  0x45   : > { %619 = vmatpush1.bf16.msra.mxu0 %v1194_v42 }
  0x46   : > { %631 = vmatprep.subr.bf16.mxu0 %v1201_v43 }
  0x48   : > { %621 = vmatmul.mubr.bf16.vlgmr.msra.gmra.mrb[0].mxu0 %v1195_v45 }
  0x49   : > { %632 = vmatpush1.bf16.msra.mxu0 %v1199_v46  ;;  %663 = vmatprep.mubr.bf16.mxu0 %v1237_v4  ;;  %v339_v4 = vsub.s32 0, %v338_v6  ;;  %v1069_v46 = vld [vmem:[#allocation2] ss:$0 sm:$0xff] }
  0x4a   : > { %633 = vmatprep.subr.bf16.mxu0 %v1204_v47 }
  0x4b   : > { %v340_v9 = vrot.slane %v335_v7, %v339_v4 }
  0x4d   : > { %634 = vmatpush1.bf16.msra.mxu0 %v1202_v49 }
  0x4e   : > { %635 = vmatprep.subr.bf16.mxu0 %v1207_v50 }
  0x51   : > { %636 = vmatpush1.bf16.msra.mxu0 %v1205_v51 }
  0x52   : > { %637 = vmatprep.subr.bf16.mxu0 %v1210_v52 }
  0x55   : > { %638 = vmatpush1.bf16.msra.mxu0 %v1208_v53 }
  0x56   : > { %639 = vmatprep.subr.bf16.mxu0 %v1213_v54 }
  0x59   : > { %640 = vmatpush1.bf16.msra.mxu0 %v1211_v56 }
  0x5a   : > { %1052 = vmatprep.subr.msk.bf16.mxu0 %vm581_vm0, %v1051_v57 }
  0x5d   : > { %642 = vmatpush1.bf16.msra.mxu0 %v583_v59 }
  0x60   : > { %1053 = vmatmul.mubr.msk.bf16.vlgmr.msra.gmra.mrb[0].mxu0 %vm577_vm1, %v1198_v60 }
 0x133   : > { %v665_v11 = vpop.f32.mrb[0].mxu0 }
 0x134   : > { %v1129_v12 = vadd.f32 %v665_v11, %v340_v9  ;;  %v667_v13 = vpop.f32.mrb[1].mxu0 }
 0x135   : > { %v1130_v14 = vadd.f32 %v667_v13, %v344_v10  ;;  %v669_v15 = vpop.f32.mrb[2].mxu0 }
 0x136   : > { %v1131_v16 = vadd.f32 %v669_v15, %v340_v9  ;;  %v671_v17 = vpop.f32.mrb[3].mxu0  ;;  %v674_v19 = vmax.f32 %v1129_v12, 0.0 }
 0x137   : > { %v1132_v18 = vadd.f32 %v671_v17, %v344_v10  ;;  %v675_v21 = vmax.f32 %v1130_v14, 0.0 }
 0x138   : > { %v676_v20 = vmax.f32 %v1131_v16, 0.0 }
 0x139   : > { %v677_v22 = vmax.f32 %v1132_v18, 0.0 }
 0x13a   : > { %v678_v25 = vpack.c.bf16 %v676_v20, %v674_v19 }
 0x13b   : > { %v679_v26 = vpack.c.bf16 %v677_v22, %v675_v21 }
 0x13d   : > { %1068 = vmatprep.mubr.msk.bf16.mxu1 %vm787_vm3, %v679_v26 }
 0x13e   : > { %828 = vmatmul.mubr.bf16.vlgmr.msra.gmra.mrb[0].mxu1 %v678_v25 }
 0x13f   : > { %1112 = vmatpush3.bf16.msra.mxu1 %v1109_v3 }
 0x140   : > { %1114 = vmatprep.subr.bf16.mxu1 %v1113_v27 }
 0x143   : > { %1116 = vmatpush3.bf16.msra.mxu1 %v1113_v27 }
 0x144   : > { %1118 = vmatprep.subr.bf16.mxu1 %v1117_v30 }
 0x147   : > { %1120 = vmatpush3.bf16.msra.mxu1 %v1117_v30 }
 0x148   : > { %1122 = vmatprep.subr.bf16.mxu1 %v1121_v33 }
 0x14b   : > { %1124 = vmatpush3.bf16.msra.mxu1 %v1121_v33 }
 0x14c   : > { %1126 = vmatprep.subr.bf16.mxu1 %v1125_v36 }
 0x14f   : > { %1128 = vmatpush3.bf16.msra.mxu1 %v1125_v36 }
 0x211   : > { %v829_v38 = vpop.f32.mrb[0].mxu1 }
 0x212   : > { %v830_v39 = vadd.f32 %v1054_v37, %v829_v38  ;;  %v831_v40 = vpop.f32.mrb[1].mxu1 }
 0x213   : > { %v832_v41 = vpop.f32.mrb[2].mxu1 }
 0x214   : > { %v836_v42 = vmax.f32 %v830_v39, 0.0  ;;  %v833_v43 = vadd.f32 %v1054_v37, %v832_v41  ;;  %v834_v44 = vpop.f32.mrb[3].mxu1 }
 0x216   : > { %v837_v45 = vmax.f32 %v833_v43, 0.0  ;;  %1106 = vmatprep.mubr.msk.f32.mxu1 %vm855_vm4, %v836_v42 }
 0x218   : > { %1107 = vmatmul.mubr.msk.f32.vlgmr.msra.gmra.mrb[4].mxu1 %vm855_vm4, %v837_v45 }
 0x2eb   : > { %v1108_v47 = vpop.f32.mrb[4].mxu1 }
 0x2ec   : > { %v928_v48 = vpop.f32.mrb[5].mxu1  ;;  %v934_v50 = vadd.f32 %v1108_v47, %v1069_v46 }
 0x2ed   : > { %v929_v49 = vadd.f32 %v1069_v46, %v928_v48 }
 0x2ee   : > { %939 = vst.msk [vmem:[%s285_s19 + $0x8] sm:$0xff] %vm937_vm5, %v934_v50 }
 0x2ef   : > { %938 = vst.msk [vmem:[%s285_s19] sm:$0xff] %vm937_vm5, %v929_v49 }
 0x2f0 PF: > { %s19_s26 = sadd.s32 1, %s1235_s26  }
 0x2f1   : > { %p16_p4 = scmp.ge.s32.totalorder %s19_s26, 4  }
 0x2f3   :  { %18 = sbr.rel (!%p16_p4) target bundleno = 3 (0x3), region = 78 }

</bundles_post_ra>
